<compile_context>
chip_gen: v7x
topology: tpu7x:2x2x1
jax: 0.10.0
libtpu: 0.0.40
codegen_flags: <defaults>
</compile_context>

<pallas_src>
import jax
import jax.numpy as jnp
from jax.experimental import pallas as pl
from jax.experimental.pallas import tpu as pltpu


# ---------------------------------------------------------------------------
# One-time capability probe: single-buffered resident inputs via Buffered(1).
# ---------------------------------------------------------------------------
_SINGLE_BUFFER_OK = None


def _probe_kernel(x_ref, o_ref):
    o_ref[...] = x_ref[...]


def _single_buffer_supported():
    """Probe once whether pipeline_mode=pl.Buffered(1) compiles; fall back to
    default double-buffering otherwise (costs VMEM, never correctness)."""
    global _SINGLE_BUFFER_OK
    if _SINGLE_BUFFER_OK is None:
        try:
            spec = pl.BlockSpec((8, 128), lambda i: (0, 0),
                                pipeline_mode=pl.Buffered(1))
            out = pl.pallas_call(
                _probe_kernel,
                grid=(1,),
                in_specs=[spec],
                out_specs=pl.BlockSpec((8, 128), lambda i: (0, 0)),
                out_shape=jax.ShapeDtypeStruct((8, 128), jnp.float32),
            )(jnp.zeros((8, 128), jnp.float32))
            jax.block_until_ready(out)
            _SINGLE_BUFFER_OK = True
        except Exception:
            _SINGLE_BUFFER_OK = False
    return _SINGLE_BUFFER_OK


# ---------------------------------------------------------------------------
# Generation-aware VMEM budgeting and tile planning.
# ---------------------------------------------------------------------------
def _vmem_budget_bytes():
    """(physical_vmem, usable_budget) with headroom for internal scratch."""
    cap = 128 * 1024 * 1024
    try:
        cap = int(pltpu.get_tpu_info().vmem_capacity_bytes)
    except Exception:
        pass
    if cap <= 64 * 1024 * 1024:
        # v7x-class (64 MiB / TensorCore): leave generous headroom.
        budget = min(cap - 12 * 1024 * 1024, 52 * 1024 * 1024)
    else:
        # v5e / v6e-class (128 MiB): allow big resident weights and 512-row tiles.
        budget = min(cap - 16 * 1024 * 1024, 112 * 1024 * 1024)
    return cap, max(budget, 16 * 1024 * 1024)


def _plan_tiles(rows, d_model, n_out, n_streams, x_item, w_item, y_item,
                single_buffer_weights):
    """Pick (tile_m, tn, n_tiles, weight_buffer_count, vmem_limit_bytes)."""
    _, budget = _vmem_budget_bytes()
    resident_bufs = 1 if single_buffer_weights else 2

    # Keep weights resident when they fit in half the budget (or N is too
    # small to tile); otherwise stream N-tiles of the weights (double-buffered).
    w_resident = n_streams * d_model * n_out * w_item * resident_bufs
    if w_resident <= budget // 2 or n_out < 256:
        tn, w_bufs = n_out, resident_bufs
    else:
        w_bufs = 2
        tn = 1024
        while tn > 128 and n_streams * d_model * tn * w_item * w_bufs > budget // 2:
            tn //= 2
        tn = min(tn, (n_out // 128) * 128)  # multiple of 128 -> unmasked stores
    n_tiles = pl.cdiv(n_out, tn)

    fixed_w = n_streams * d_model * tn * w_item * w_bufs
    per_row = n_streams * 2 * (d_model * x_item + tn * y_item)  # dbl-buffered x/y
    target = 512 if budget > 60 * 1024 * 1024 else 256          # smaller on v7x
    tile_m = max(8, min(target, max(budget - fixed_w, 0) // per_row))
    if tile_m >= rows:
        tile_m = rows
    elif tile_m >= 16:
        tile_m = (tile_m // 16) * 16  # multiple of 16: bf16 sublane packing
    else:
        tile_m = 8

    est = fixed_w + per_row * tile_m
    vmem_limit = int(min(max(2 * est, 32 * 1024 * 1024), budget))
    return tile_m, tn, n_tiles, w_bufs, vmem_limit


# ---------------------------------------------------------------------------
# Kernel.
# ---------------------------------------------------------------------------
def _make_proj_kernel(n_streams):
    """Kernel doing `n_streams` independent (tile_m, K) @ (K, tn) matmuls."""

    def kernel(*refs):
        x_refs = refs[:n_streams]
        w_refs = refs[n_streams:2 * n_streams]
        y_refs = refs[2 * n_streams:]
        for x_ref, w_ref, y_ref in zip(x_refs, w_refs, y_refs):
            x = x_ref[...]
            if x.dtype != w_ref.dtype:
                # In-VMEM cast to the compute dtype (e.g. bf16) — no extra
                # wrapper-side XLA cast pass over HBM.
                x = x.astype(w_ref.dtype)
            y_ref[...] = jnp.dot(
                x, w_ref[...], preferred_element_type=jnp.float32
            ).astype(y_ref.dtype)

    return kernel


def _qkv_projection(xs, wts, out_dtype):
    """xs: tuple of (rows, d_model); wts: matching (d_model, N) pre-transposed
    weights.  Returns tuple of (rows, N) projections."""
    n_streams = len(xs)
    rows, d_model = xs[0].shape
    n_out = wts[0].shape[1]

    x_item = jnp.dtype(xs[0].dtype).itemsize
    w_item = jnp.dtype(wts[0].dtype).itemsize
    y_item = jnp.dtype(out_dtype).itemsize

    tile_m, tn, n_tiles, w_bufs, vmem_limit = _plan_tiles(
        rows, d_model, n_out, n_streams, x_item, w_item, y_item,
        single_buffer_weights=_single_buffer_supported())

    grid = (pl.cdiv(rows, tile_m), n_tiles)

    # Activation tile: resident across the inner N axis (index map ignores n).
    x_spec = pl.BlockSpec((tile_m, d_model), lambda r, n: (r, 0))
    if w_bufs == 1:
        # Resident weights, single-buffered: constant index map + Buffered(1).
        w_spec = pl.BlockSpec((d_model, tn), lambda r, n: (0, n),
                              pipeline_mode=pl.Buffered(1))
    else:
        w_spec = pl.BlockSpec((d_model, tn), lambda r, n: (0, n))
    y_spec = pl.BlockSpec((tile_m, tn), lambda r, n: (r, n))
    y_shape = jax.ShapeDtypeStruct((rows, n_out), out_dtype)

    outs = pl.pallas_call(
        _make_proj_kernel(n_streams),
        grid=grid,
        in_specs=[x_spec] * n_streams + [w_spec] * n_streams,
        out_specs=tuple([y_spec] * n_streams),
        out_shape=tuple([y_shape] * n_streams),
        compiler_params=pltpu.CompilerParams(
            dimension_semantics=("parallel", "arbitrary"),
            vmem_limit_bytes=vmem_limit),
    )(*xs, *wts)
    return tuple(outs)


# ---------------------------------------------------------------------------
# Wrapper-side plumbing (matches the torch forward contract exactly).
# ---------------------------------------------------------------------------
def _split_heads(y, num_heads, bs, seq):
    # torch.cat(torch.chunk(y, H, dim=2), dim=0):
    #   out[h*bs + b, s, d] = y[b, s, h*head_dim + d]
    # TODO(synk): if the downstream attention kernel consumed (bs, seq, H, Dh)
    # directly via its BlockSpec index_map, this transpose (one extra HBM
    # read+write per output) could be dropped; it is materialized here only to
    # match the torch module's output shape.
    rows, d_model = y.shape
    head_dim = d_model // num_heads
    y = y.reshape(bs, seq, num_heads, head_dim)
    y = jnp.transpose(y, (2, 0, 1, 3))
    return y.reshape(num_heads * bs, seq, head_dim)


def prepare_qkv_weights(wq, wk, wv, *, compute_dtype=None, fuse=False):
    """Pre-transpose nn.Linear weights (out,in)->(in,out) ONCE, outside the
    per-call hot path.  Optionally cast to a lower-precision compute dtype
    (bf16 recommended on v6e/v7x) and/or fuse into one (d_model, 3*d_model)
    matrix for the query-is-key-is-value (self-attention) fast path."""
    ws = [jnp.asarray(w).T for w in (wq, wk, wv)]
    if compute_dtype is not None:
        ws = [w.astype(compute_dtype) for w in ws]
    if fuse:
        return jnp.concatenate(ws, axis=1)
    return tuple(ws)


def multihead_attention_in(query, key, value, weights, num_heads):
    """Pallas equivalent of MultiheadAttention_In.forward.

    `weights` is either a 3-tuple of pre-transposed (d_model, d_model) weights
    from prepare_qkv_weights, or a single fused (d_model, 3*d_model) weight
    (only valid when query is key is value)."""
    bs, seq, d_model = query.shape
    head_dim = d_model // num_heads
    assert head_dim * num_heads == d_model
    out_dtype = query.dtype
    rows = bs * seq

    if isinstance(weights, (tuple, list)):
        assert len(weights) == 3
        xs = (query.reshape(rows, d_model),
              key.reshape(rows, d_model),
              value.reshape(rows, d_model))
        yq, yk, yv = _qkv_projection(xs, tuple(weights), out_dtype)
    else:
        assert (query is key) and (key is value), \
            "fused weights require query is key is value (self-attention)"
        assert weights.shape == (d_model, 3 * d_model)
        (y,) = _qkv_projection((query.reshape(rows, d_model),), (weights,),
                               out_dtype)
        yq, yk, yv = jnp.split(y, 3, axis=-1)

    q = _split_heads(yq, num_heads, bs, seq)
    k = _split_heads(yk, num_heads, bs, seq)
    v = _split_heads(yv, num_heads, bs, seq)
    return q, k, v


def _xavier_uniform(key, out_features, in_features, dtype=jnp.float32):
    bound = (6.0 / (in_features + out_features)) ** 0.5
    return jax.random.uniform(key, (out_features, in_features),
                              minval=-bound, maxval=bound, dtype=dtype)


if __name__ == "__main__":
    bs, seq, d_model, num_heads = 2, 8, 32, 4
    head_dim = d_model // num_heads

    root = jax.random.PRNGKey(0)
    kq, kk, kv, kwq, kwk, kwv = jax.random.split(root, 6)

    query = jax.random.normal(kq, (bs, seq, d_model), dtype=jnp.float32)
    key_in = jax.random.normal(kk, (bs, seq, d_model), dtype=jnp.float32)
    value = jax.random.normal(kv, (bs, seq, d_model), dtype=jnp.float32)

    # nn.Linear weights: (out_features, in_features), xavier_uniform init.
    wq = _xavier_uniform(kwq, d_model, d_model)
    wk = _xavier_uniform(kwk, d_model, d_model)
    wv = _xavier_uniform(kwv, d_model, d_model)

    # Weight prep happens once, outside the hot path.
    w_sep = prepare_qkv_weights(wq, wk, wv)
    w_fused = prepare_qkv_weights(wq, wk, wv, fuse=True)

    # General (cross-attention style) path: three activation streams.
    q_out, k_out, v_out = multihead_attention_in(
        query, key_in, value, w_sep, num_heads)
    # Fused self-attention path: one activation stream, one (d, 3d) matmul.
    q_s, k_s, v_s = multihead_attention_in(
        query, query, query, w_fused, num_heads)
    jax.block_until_ready((q_out, k_out, v_out, q_s, k_s, v_s))

    # Reference: plain-JAX implementation of the torch semantics.
    def ref(x, w):
        y = x @ w.T                                   # nn.Linear, bias=False
        chunks = jnp.split(y, num_heads, axis=2)      # chunk along dim=2
        return jnp.concatenate(chunks, axis=0)        # cat along dim=0

    checks = ((q_out, query, wq), (k_out, key_in, wk), (v_out, value, wv),
              (q_s, query, wq), (k_s, query, wk), (v_s, query, wv))
    for got, x, w in checks:
        assert got.shape == (num_heads * bs, seq, head_dim)
        assert jnp.allclose(got, ref(x, w), atol=1e-5)

    print("KERNEL_OK")
</pallas_src>

<mosaic_0001>
module attributes {stable_mosaic.version = 11 : i64} {
  func.func @_probe_kernel(%arg0: i32, %arg1: memref<8x128xf32, #tpu.memory_space<vmem>>, %arg2: memref<8x128xf32, #tpu.memory_space<vmem>>) attributes {dimension_semantics = [#tpu.dimension_semantics<arbitrary>], iteration_bounds = array<i64: 1>, scalar_prefetch = 0 : i64, scratch_operands = 0 : i64, tpu.core_type = #tpu.core_type<tc>, window_params = [{pipeline_mode = #tpu.pipeline_mode<synchronous>, transform_indices = @transform_0, window_bounds = array<i64: 8, 128>}, {pipeline_mode = #tpu.pipeline_mode<synchronous>, transform_indices = @transform_1, window_bounds = array<i64: 8, 128>}]} {
    %c0 = arith.constant 0 : index
    %c0_0 = arith.constant 0 : index
    %0 = vector.load %arg1[%c0, %c0_0] : memref<8x128xf32, #tpu.memory_space<vmem>>, vector<8x128xf32>
    %c0_1 = arith.constant 0 : index
    %c0_2 = arith.constant 0 : index
    %1 = vector.load %arg2[%c0_1, %c0_2] : memref<8x128xf32, #tpu.memory_space<vmem>>, vector<8x128xf32>
    tpu.vector_store %arg2[%c0_1, %c0_2], %0 {strides = array<i32>} : memref<8x128xf32, #tpu.memory_space<vmem>>, vector<8x128xf32>,
    return
  }
  func.func @transform_0(%arg0: i32) -> (i32, i32) {
    %c0_i32 = arith.constant 0 : i32
    %c0_i32_0 = arith.constant 0 : i32
    %c0_i32_1 = arith.constant 0 : i32
    return %c0_i32, %c0_i32_0 : i32, i32
  }
  func.func @transform_1(%arg0: i32) -> (i32, i32) {
    %c0_i32 = arith.constant 0 : i32
    %c0_i32_0 = arith.constant 0 : i32
    %c0_i32_1 = arith.constant 0 : i32
    return %c0_i32, %c0_i32_0 : i32, i32
  }
}

module attributes {stable_mosaic.version = 11 : i64} {
  func.func @kernel(%arg0: i32, %arg1: i32, %arg2: memref<16x32xf32, #tpu.memory_space<vmem>>, %arg3: memref<16x32xf32, #tpu.memory_space<vmem>>, %arg4: memref<16x32xf32, #tpu.memory_space<vmem>>, %arg5: memref<32x32xf32, #tpu.memory_space<vmem>>, %arg6: memref<32x32xf32, #tpu.memory_space<vmem>>, %arg7: memref<32x32xf32, #tpu.memory_space<vmem>>, %arg8: memref<16x32xf32, #tpu.memory_space<vmem>>, %arg9: memref<16x32xf32, #tpu.memory_space<vmem>>, %arg10: memref<16x32xf32, #tpu.memory_space<vmem>>) attributes {dimension_semantics = [#tpu.dimension_semantics<parallel>, #tpu.dimension_semantics<arbitrary>], iteration_bounds = array<i64: 1, 1>, scalar_prefetch = 0 : i64, scratch_operands = 0 : i64, tpu.core_type = #tpu.core_type<tc>, window_params = [{transform_indices = @transform_0, window_bounds = array<i64: 16, 32>}, {transform_indices = @transform_1, window_bounds = array<i64: 16, 32>}, {transform_indices = @transform_2, window_bounds = array<i64: 16, 32>}, {transform_indices = @transform_3, window_bounds = array<i64: 32, 32>}, {transform_indices = @transform_4, window_bounds = array<i64: 32, 32>}, {transform_indices = @transform_5, window_bounds = array<i64: 32, 32>}, {transform_indices = @transform_6, window_bounds = array<i64: 16, 32>}, {transform_indices = @transform_7, window_bounds = array<i64: 16, 32>}, {transform_indices = @transform_8, window_bounds = array<i64: 16, 32>}]} {
    %c0 = arith.constant 0 : index
    %c0_0 = arith.constant 0 : index
    %0 = vector.load %arg2[%c0, %c0_0] : memref<16x32xf32, #tpu.memory_space<vmem>>, vector<16x32xf32>
    %c0_1 = arith.constant 0 : index
    %c0_2 = arith.constant 0 : index
    %1 = vector.load %arg5[%c0_1, %c0_2] : memref<32x32xf32, #tpu.memory_space<vmem>>, vector<32x32xf32>
    %cst = arith.constant dense<0.000000e+00> : vector<16x32xf32>
    %2 = tpu.matmul %0, %1, %cst {dimension_numbers = #tpu.dot_dimension_numbers<[1], [0], [0], [1], [0, 0, 1, 1], [], []>} : vector<16x32xf32>, vector<32x32xf32>, vector<16x32xf32> -> vector<16x32xf32>
    %c0_3 = arith.constant 0 : index
    %c0_4 = arith.constant 0 : index
    %3 = vector.load %arg8[%c0_3, %c0_4] : memref<16x32xf32, #tpu.memory_space<vmem>>, vector<16x32xf32>
    tpu.vector_store %arg8[%c0_3, %c0_4], %2 {strides = array<i32>} : memref<16x32xf32, #tpu.memory_space<vmem>>, vector<16x32xf32>,
    %c0_5 = arith.constant 0 : index
    %c0_6 = arith.constant 0 : index
    %4 = vector.load %arg3[%c0_5, %c0_6] : memref<16x32xf32, #tpu.memory_space<vmem>>, vector<16x32xf32>
    %c0_7 = arith.constant 0 : index
    %c0_8 = arith.constant 0 : index
    %5 = vector.load %arg6[%c0_7, %c0_8] : memref<32x32xf32, #tpu.memory_space<vmem>>, vector<32x32xf32>
    %cst_9 = arith.constant dense<0.000000e+00> : vector<16x32xf32>
    %6 = tpu.matmul %4, %5, %cst_9 {dimension_numbers = #tpu.dot_dimension_numbers<[1], [0], [0], [1], [0, 0, 1, 1], [], []>} : vector<16x32xf32>, vector<32x32xf32>, vector<16x32xf32> -> vector<16x32xf32>
    %c0_10 = arith.constant 0 : index
    %c0_11 = arith.constant 0 : index
    %7 = vector.load %arg9[%c0_10, %c0_11] : memref<16x32xf32, #tpu.memory_space<vmem>>, vector<16x32xf32>
    tpu.vector_store %arg9[%c0_10, %c0_11], %6 {strides = array<i32>} : memref<16x32xf32, #tpu.memory_space<vmem>>, vector<16x32xf32>,
    %c0_12 = arith.constant 0 : index
    %c0_13 = arith.constant 0 : index
    %8 = vector.load %arg4[%c0_12, %c0_13] : memref<16x32xf32, #tpu.memory_space<vmem>>, vector<16x32xf32>
    %c0_14 = arith.constant 0 : index
    %c0_15 = arith.constant 0 : index
    %9 = vector.load %arg7[%c0_14, %c0_15] : memref<32x32xf32, #tpu.memory_space<vmem>>, vector<32x32xf32>
    %cst_16 = arith.constant dense<0.000000e+00> : vector<16x32xf32>
    %10 = tpu.matmul %8, %9, %cst_16 {dimension_numbers = #tpu.dot_dimension_numbers<[1], [0], [0], [1], [0, 0, 1, 1], [], []>} : vector<16x32xf32>, vector<32x32xf32>, vector<16x32xf32> -> vector<16x32xf32>
    %c0_17 = arith.constant 0 : index
    %c0_18 = arith.constant 0 : index
    %11 = vector.load %arg10[%c0_17, %c0_18] : memref<16x32xf32, #tpu.memory_space<vmem>>, vector<16x32xf32>
    tpu.vector_store %arg10[%c0_17, %c0_18], %10 {strides = array<i32>} : memref<16x32xf32, #tpu.memory_space<vmem>>, vector<16x32xf32>,
    return
  }
  func.func @transform_0(%arg0: i32, %arg1: i32) -> (i32, i32) {
    %c0_i32 = arith.constant 0 : i32
    %c0_i32_0 = arith.constant 0 : i32
    return %arg0, %c0_i32 : i32, i32
  }
  func.func @transform_1(%arg0: i32, %arg1: i32) -> (i32, i32) {
    %c0_i32 = arith.constant 0 : i32
    %c0_i32_0 = arith.constant 0 : i32
    return %arg0, %c0_i32 : i32, i32
  }
  func.func @transform_2(%arg0: i32, %arg1: i32) -> (i32, i32) {
    %c0_i32 = arith.constant 0 : i32
    %c0_i32_0 = arith.constant 0 : i32
    return %arg0, %c0_i32 : i32, i32
  }
  func.func @transform_3(%arg0: i32, %arg1: i32) -> (i32, i32) {
    %c0_i32 = arith.constant 0 : i32
    %c0_i32_0 = arith.constant 0 : i32
    return %c0_i32, %arg1 : i32, i32
  }
  func.func @transform_4(%arg0: i32, %arg1: i32) -> (i32, i32) {
    %c0_i32 = arith.constant 0 : i32
    %c0_i32_0 = arith.constant 0 : i32
    return %c0_i32, %arg1 : i32, i32
  }
  func.func @transform_5(%arg0: i32, %arg1: i32) -> (i32, i32) {
    %c0_i32 = arith.constant 0 : i32
    %c0_i32_0 = arith.constant 0 : i32
    return %c0_i32, %arg1 : i32, i32
  }
  func.func @transform_6(%arg0: i32, %arg1: i32) -> (i32, i32) {
    %c0_i32 = arith.constant 0 : i32
    return %arg0, %arg1 : i32, i32
  }
  func.func @transform_7(%arg0: i32, %arg1: i32) -> (i32, i32) {
    %c0_i32 = arith.constant 0 : i32
    return %arg0, %arg1 : i32, i32
  }
  func.func @transform_8(%arg0: i32, %arg1: i32) -> (i32, i32) {
    %c0_i32 = arith.constant 0 : i32
    return %arg0, %arg1 : i32, i32
  }
}

</mosaic_0001>

<bundles_post_ra>
// kernel: tpu_custom_call.1
= control target key start
LH: loop header
LB: loop body
LE: loop exit
PB: predicated region body
PF: predicated region fallthrough
CT: control target
= control target key end

     0   :  { %6 = vsyncpa [#allocation3], 0  ;;  %s124_s0 = inlined_call_operand.hbm [shape: f32[8,128], index: 0, kind: input, shape index: {}]   ;;  %s125_s1 = inlined_call_operand.hbm [shape: f32[8,128], index: 1, kind: output, shape index: {}]  }
   0x1   :  { %7 = vsyncpa [#allocation4], 0  ;;  %s88_s6 = smov [#allocation2]   ;;  %s40_s10 = scalar_lea.hbm %s124_s0, 128 }
   0x2   :  { %s14_s7 = sshll.u32 %s88_s6, 4  ;;  %p41_p0 = scmp.ne.s32.totalorder %s124_s0, %s40_s10  ;;  %s15_s7 = int_to_ptr.vmem [resolvable:$true] %s14_s7 }
   0x3   :  { %p44_p1 = scmp.lt.u32.totalorder %s40_s10, %s124_s0 }
   0x5   :  { %p46_p2 = pnand %p44_p1, %p41_p0 }
   0x7   :  { %49 = shalt.err (!%p46_p2)
}
   0x8   :  { %s50_s15 = scalar_lea.vmem %s15_s7, 128  ;;  %p55_p4 = scmp.lt.s32.totalorder %s15_s7, %s15_s7 }
   0x9   :  { %p51_p3 = scmp.ne.s32.totalorder %s15_s7, %s50_s15  ;;  %p56_p5 = scmp.lt.s32.totalorder %s50_s15, %s50_s15 }
   0xb   :  { %p57_p6 = por %p56_p5, %p55_p4 }
   0xd   :  { %p58_p7 = pnand %p57_p6, %p51_p3 }
   0xf   :  { %61 = shalt.err (!%p58_p7)
}
  0x10   :  { %17 = dma.hbm_to_vmem [thread:$0]  %s124_s0, 128, %s15_s7, [#allocation3]  }
  0x11   :  { %84 = dma.done.wait [#allocation3], 128  }
  0x12   :  { %85 = vsyncadd [#allocation3], 4294967168  ;;  %s89_s18 = smov [#allocation5]   ;;  %v21_v0 = vld [vmem:[#allocation2] sm:$0xff] }
  0x13   :  { %s29_s19 = sshll.u32 %s89_s18, 4  ;;  %22 = vst [vmem:[#allocation5] sm:$0xff] %v21_v0  ;;  %s30_s19 = int_to_ptr.vmem [resolvable:$true] %s29_s19 }
  0x14   :  { %s62_s20 = scalar_lea.vmem %s30_s19, 128  ;;  %p67_p9 = scmp.lt.s32.totalorder %s30_s19, %s30_s19 }
  0x15   :  { %p63_p8 = scmp.ne.s32.totalorder %s30_s19, %s62_s20  ;;  %p68_p10 = scmp.lt.s32.totalorder %s62_s20, %s62_s20 }
  0x17   :  { %p69_p11 = por %p68_p10, %p67_p9 }
  0x19   :  { %p70_p12 = pnand %p69_p11, %p63_p8 }
  0x1b   :  { %73 = shalt.err (!%p70_p12)
}
  0x1c   :  { %s74_s23 = scalar_lea.hbm %s125_s1, 128 }
  0x1d   :  { %p75_p13 = scmp.ne.s32.totalorder %s125_s1, %s74_s23  ;;  %p78_p0 = scmp.lt.u32.totalorder %s74_s23, %s125_s1 }
  0x1f   :  { %p80_p1 = pnand %p78_p0, %p75_p13 }
  0x21   :  { %83 = shalt.err (!%p80_p1)
}
  0x22   :  { %32 = dma.vmem_to_hbm [thread:$0]  %s30_s19, 128, %s125_s1, [#allocation4]  }
  0x23   :  { %86 = dma.done.wait [#allocation4], 128  }
  0x24   :  { %87 = vsyncadd [#allocation4], 4294967168 }
  0x25   :  { %36 = vsyncpa [#allocation3], 1 }
  0x26   :  { %37 = vsyncpa [#allocation4], 1 }

// kernel: tpu_custom_call.1
= control target key start
LH: loop header
LB: loop body
LE: loop exit
PB: predicated region body
PF: predicated region fallthrough
CT: control target
= control target key end

     0   :  { %14 = vsyncpa [#allocation3], 0  ;;  %s962_s0 = inlined_call_operand.hbm [shape: f32[16,32], index: 0, kind: input, shape index: {}]   ;;  %s963_s1 = inlined_call_operand.hbm [shape: f32[16,32], index: 1, kind: input, shape index: {}]   ;;  %s964_s2 = inlined_call_operand.hbm [shape: f32[16,32], index: 2, kind: input, shape index: {}]   ;;  %s965_s3 = inlined_call_operand.hbm [shape: f32[32,32], index: 3, kind: input, shape index: {}]   ;;  %s966_s4 = inlined_call_operand.hbm [shape: f32[32,32], index: 4, kind: input, shape index: {}]   ;;  %s967_s5 = inlined_call_operand.hbm [shape: f32[32,32], index: 5, kind: input, shape index: {}]   ;;  %s968_s6 = inlined_call_operand.hbm [shape: f32[16,32], index: 6, kind: output, shape index: {0}]   ;;  %s969_s7 = inlined_call_operand.hbm [shape: f32[16,32], index: 7, kind: output, shape index: {1}]   ;;  %s970_s8 = inlined_call_operand.hbm [shape: f32[16,32], index: 8, kind: output, shape index: {2}]  }
   0x1   :  { %15 = vsyncpa [#allocation6], 0 }
   0x2   :  { %16 = vsyncpa [#allocation9], 0 }
   0x3   :  { %17 = vsyncpa [#allocation12], 0 }
   0x4   :  { %18 = vsyncpa [#allocation4], 0 }
   0x5   :  { %19 = vsyncpa [#allocation15], 0  ;;  %s731_s27 = smov [#allocation5]   ;;  %s732_s29 = smov [#allocation8]  }
   0x6   :  { %s37_s28 = sshll.u32 %s731_s27, 4  ;;  %s61_s30 = sshll.u32 %s732_s29, 4  ;;  %s38_s28 = int_to_ptr.vmem [resolvable:$true] %s37_s28  ;;  %s787_s30 = int_to_ptr.vmem [resolvable:$true] %s61_s30 }
   0x7   :  { %s521_s11 = scalar_lea.hbm %s963_s1, 256 }
   0x8   :  { %p522_p0 = scmp.ne.s32.totalorder %s963_s1, %s521_s11  ;;  %p525_p1 = scmp.lt.u32.totalorder %s521_s11, %s963_s1 }
   0xa   :  { %p527_p2 = pnand %p525_p1, %p522_p0 }
   0xc   :  { %530 = shalt.err (!%p527_p2)
}
   0xd   :  { %s531_s16 = scalar_lea.vmem %s38_s28, 256  ;;  %p536_p4 = scmp.lt.s32.totalorder %s38_s28, %s38_s28 }
   0xe   :  { %p532_p3 = scmp.ne.s32.totalorder %s38_s28, %s531_s16  ;;  %p537_p5 = scmp.lt.s32.totalorder %s531_s16, %s531_s16 }
  0x10   :  { %p538_p6 = por %p537_p5, %p536_p4 }
  0x12   :  { %p539_p7 = pnand %p538_p6, %p532_p3 }
  0x14   :  { %542 = shalt.err (!%p539_p7)
}
  0x15   :  { %s733_s17 = smov 128   ;;  %s734_s18 = smov 8  }
  0x16   :  { %43 = dma.hbm_to_vmem [thread:$0]  %s963_s1, 256, %s38_s28, [#allocation6], %s733_s17, %s733_s17, %s734_s18  }
  0x17   :  { %s543_s23 = scalar_lea.hbm %s965_s3, 512 }
  0x18   :  { %p544_p8 = scmp.ne.s32.totalorder %s965_s3, %s543_s23  ;;  %p547_p9 = scmp.lt.u32.totalorder %s543_s23, %s965_s3 }
  0x1a   :  { %p549_p10 = pnand %p547_p9, %p544_p8 }
  0x1c   :  { %552 = shalt.err (!%p549_p10)
}
  0x1d   :  { %s553_s29 = scalar_lea.vmem %s787_s30, 512  ;;  %p558_p12 = scmp.lt.s32.totalorder %s787_s30, %s787_s30 }
  0x1e   :  { %p554_p11 = scmp.ne.s32.totalorder %s787_s30, %s553_s29  ;;  %p559_p13 = scmp.lt.s32.totalorder %s553_s29, %s553_s29 }
  0x20   :  { %p560_p0 = por %p559_p13, %p558_p12 }
  0x22   :  { %p561_p1 = pnand %p560_p0, %p554_p11 }
  0x24   :  { %564 = shalt.err (!%p561_p1)
}
  0x25   :  { %67 = dma.hbm_to_vmem [thread:$0]  %s965_s3, 512, %s787_s30, [#allocation9], %s733_s17, %s733_s17, %s734_s18  }
  0x26   :  { %s735_s9 = smov [#allocation2]   ;;  %s736_s11 = smov [#allocation7]  }
  0x27   :  { %s25_s10 = sshll.u32 %s735_s9, 4  ;;  %s49_s12 = sshll.u32 %s736_s11, 4  ;;  %s26_s10 = int_to_ptr.vmem [resolvable:$true] %s25_s10  ;;  %s824_s12 = int_to_ptr.vmem [resolvable:$true] %s49_s12 }
  0x28   :  { %s565_s15 = scalar_lea.hbm %s962_s0, 256 }
  0x29   :  { %p566_p2 = scmp.ne.s32.totalorder %s962_s0, %s565_s15  ;;  %p569_p3 = scmp.lt.u32.totalorder %s565_s15, %s962_s0 }
  0x2b   :  { %p571_p4 = pnand %p569_p3, %p566_p2 }
  0x2d   :  { %574 = shalt.err (!%p571_p4)
}
  0x2e   :  { %s575_s3 = scalar_lea.vmem %s26_s10, 256  ;;  %p580_p6 = scmp.lt.s32.totalorder %s26_s10, %s26_s10 }
  0x2f   :  { %p576_p5 = scmp.ne.s32.totalorder %s26_s10, %s575_s3  ;;  %p581_p7 = scmp.lt.s32.totalorder %s575_s3, %s575_s3 }
  0x31   :  { %p582_p8 = por %p581_p7, %p580_p6 }
  0x33   :  { %p583_p9 = pnand %p582_p8, %p576_p5 }
  0x35   :  { %586 = shalt.err (!%p583_p9)
}
  0x36   :  { %31 = dma.hbm_to_vmem [thread:$0]  %s962_s0, 256, %s26_s10, [#allocation3], %s733_s17, %s733_s17, %s734_s18  }
  0x37   :  { %s587_s25 = scalar_lea.hbm %s964_s2, 256 }
  0x38   :  { %p588_p10 = scmp.ne.s32.totalorder %s964_s2, %s587_s25  ;;  %p591_p11 = scmp.lt.u32.totalorder %s587_s25, %s964_s2 }
  0x3a   :  { %p593_p12 = pnand %p591_p11, %p588_p10 }
  0x3c   :  { %596 = shalt.err (!%p593_p12)
}
  0x3d   :  { %s597_s28 = scalar_lea.vmem %s824_s12, 256  ;;  %p602_p0 = scmp.lt.s32.totalorder %s824_s12, %s824_s12 }
  0x3e   :  { %p598_p13 = scmp.ne.s32.totalorder %s824_s12, %s597_s28  ;;  %p603_p1 = scmp.lt.s32.totalorder %s597_s28, %s597_s28 }
  0x40   :  { %p604_p2 = por %p603_p1, %p602_p0 }
  0x42   :  { %p605_p3 = pnand %p604_p2, %p598_p13 }
  0x44   :  { %608 = shalt.err (!%p605_p3)
}
  0x45   :  { %55 = dma.hbm_to_vmem [thread:$0]  %s964_s2, 256, %s824_s12, [#allocation6], %s733_s17, %s733_s17, %s734_s18  }
  0x46   :  { %s737_s10 = smov [#allocation10]   ;;  %s738_s13 = smov [#allocation11]  }
  0x47   :  { %s73_s11 = sshll.u32 %s737_s10, 4  ;;  %s85_s14 = sshll.u32 %s738_s13, 4  ;;  %s74_s11 = int_to_ptr.vmem [resolvable:$true] %s73_s11  ;;  %s861_s14 = int_to_ptr.vmem [resolvable:$true] %s85_s14 }
  0x48   :  { %s609_s19 = scalar_lea.hbm %s966_s4, 512 }
  0x49   :  { %p610_p4 = scmp.ne.s32.totalorder %s966_s4, %s609_s19  ;;  %p613_p5 = scmp.lt.u32.totalorder %s609_s19, %s966_s4 }
  0x4b   :  { %p615_p6 = pnand %p613_p5, %p610_p4 }
  0x4d   :  { %618 = shalt.err (!%p615_p6)
}
  0x4e   :  { %s619_s2 = scalar_lea.vmem %s74_s11, 512  ;;  %p624_p8 = scmp.lt.s32.totalorder %s74_s11, %s74_s11 }
  0x4f   :  { %p620_p7 = scmp.ne.s32.totalorder %s74_s11, %s619_s2  ;;  %p625_p9 = scmp.lt.s32.totalorder %s619_s2, %s619_s2 }
  0x51   :  { %p626_p10 = por %p625_p9, %p624_p8 }
  0x53   :  { %p627_p11 = pnand %p626_p10, %p620_p7 }
  0x55   :  { %630 = shalt.err (!%p627_p11)
}
  0x56   :  { %79 = dma.hbm_to_vmem [thread:$0]  %s966_s4, 512, %s74_s11, [#allocation9], %s733_s17, %s733_s17, %s734_s18  }
  0x57   :  { %s631_s25 = scalar_lea.hbm %s967_s5, 512 }
  0x58   :  { %p632_p12 = scmp.ne.s32.totalorder %s967_s5, %s631_s25  ;;  %p635_p13 = scmp.lt.u32.totalorder %s631_s25, %s967_s5 }
  0x5a   :  { %p637_p0 = pnand %p635_p13, %p632_p12 }
  0x5c   :  { %640 = shalt.err (!%p637_p0)
}
  0x5d   :  { %s641_s28 = scalar_lea.vmem %s861_s14, 512  ;;  %p646_p2 = scmp.lt.s32.totalorder %s861_s14, %s861_s14 }
  0x5e   :  { %p642_p1 = scmp.ne.s32.totalorder %s861_s14, %s641_s28  ;;  %p647_p3 = scmp.lt.s32.totalorder %s641_s28, %s641_s28 }
  0x60   :  { %p648_p4 = por %p647_p3, %p646_p2 }
  0x62   :  { %p649_p5 = pnand %p648_p4, %p642_p1 }
  0x64   :  { %652 = shalt.err (!%p649_p5)
}
  0x65   :  { %91 = dma.hbm_to_vmem [thread:$0]  %s967_s5, 512, %s861_s14, [#allocation12], %s733_s17, %s733_s17, %s734_s18  }
  0x66   :  { %719 = dma.done.wait [#allocation3], 256  }
  0x67   :  { %720 = vsyncadd [#allocation3], 4294967040 }
  0x68   :  { %721 = dma.done.wait [#allocation6], 512  }
  0x69   :  { %722 = vsyncadd [#allocation6], 4294966784 }
  0x6a   :  { %723 = dma.done.wait [#allocation9], 1024  }
  0x6b   :  { %724 = vsyncadd [#allocation9], 4294966272 }
  0x6c   :  { %725 = dma.done.wait [#allocation12], 512  }
  0x6d   :  { %726 = vsyncadd [#allocation12], 4294966784  ;;  %v112_v0 = vld [vmem:[#allocation8] sm:$0xff]  ;;  %v113_v1 = vld [vmem:[#allocation8 + $0x8] sm:$0xff]  ;;  %vm116_vm0 = vcmask 261120   ;;  %s739_s5 = smov [#allocation13]  }
  0x6e   :  { %v114_v2 = vld [vmem:[#allocation8 + $0x10] sm:$0xff]  ;;  %v486_v3 = vpack.c.bf16 %v113_v1, %v112_v0  ;;  %v115_v4 = vld [vmem:[#allocation8 + $0x18] sm:$0xff]  ;;  %v202_v5 = vld [vmem:[#allocation10] sm:$0xff]  ;;  %s383_s9 = sshll.u32 %s739_s5, 4  ;;  %s740_s10 = smov [#allocation14]   ;;  %s384_s9 = int_to_ptr.vmem [resolvable:$true] %s383_s9 }
  0x6f   :  { %v203_v6 = vld [vmem:[#allocation10 + $0x8] sm:$0xff]  ;;  %v490_v7 = vpack.c.bf16 %v115_v4, %v114_v2  ;;  %v110_v9 = vld [vmem:[#allocation2] sm:$0xff]  ;;  %v291_v10 = vld [vmem:[#allocation11] sm:$0xff]  ;;  %s395_s11 = sshll.u32 %s740_s10, 4  ;;  %s653_s13 = scalar_lea.vmem %s384_s9, 256  ;;  %s905_s11 = int_to_ptr.vmem [resolvable:$true] %s395_s11 }
  0x70   :  { %v494_v8 = vpack.c.bf16 %v203_v6, %v202_v5  ;;  %487 = vmatprep.subr.bf16.mxu0 %v486_v3  ;;  %461 = vmatprep.mubr.msk.f32.mxu0 %vm116_vm0, %v110_v9  ;;  %v292_v11 = vld [vmem:[#allocation11 + $0x8] sm:$0xff]  ;;  %v204_v12 = vld [vmem:[#allocation10 + $0x10] sm:$0xff]  ;;  %v205_v13 = vld [vmem:[#allocation10 + $0x18] sm:$0xff]  ;;  %p654_p6 = scmp.ne.s32.totalorder %s384_s9, %s653_s13  ;;  %p658_p7 = scmp.lt.s32.totalorder %s384_s9, %s384_s9 }
  0x71   :  { %489 = vmatpush3.bf16.msra.mxu0 %v486_v3  ;;  %v498_v14 = vpack.c.bf16 %v205_v13, %v204_v12  ;;  %v200_v15 = vld [vmem:[#allocation5] sm:$0xff]  ;;  %v502_v16 = vpack.c.bf16 %v292_v11, %v291_v10  ;;  %v293_v17 = vld [vmem:[#allocation11 + $0x10] sm:$0xff]  ;;  %v294_v18 = vld [vmem:[#allocation11 + $0x18] sm:$0xff]  ;;  %p659_p8 = scmp.lt.s32.totalorder %s653_s13, %s653_s13 }
  0x72   :  { %495 = vmatprep.subr.bf16.mxu1 %v494_v8  ;;  %491 = vmatprep.subr.bf16.mxu0 %v490_v7  ;;  %v111_v19 = vld [vmem:[#allocation2 + $0x8] sm:$0xff]  ;;  %v506_v20 = vpack.c.bf16 %v294_v18, %v293_v17  ;;  %v201_v21 = vld [vmem:[#allocation5 + $0x8] sm:$0xff]  ;;  %v289_v22 = vld [vmem:[#allocation7] sm:$0xff] }
  0x73   :  { %497 = vmatpush3.bf16.msra.mxu1 %v494_v8  ;;  %472 = vmatprep.mubr.msk.f32.mxu1 %vm116_vm0, %v200_v15  ;;  %v290_v23 = vld [vmem:[#allocation7 + $0x8] sm:$0xff]  ;;  %p660_p9 = por %p659_p8, %p658_p7 }
  0x74   :  { %499 = vmatprep.subr.bf16.mxu1 %v498_v14 }
  0x75   :  { %493 = vmatpush3.bf16.msra.mxu0 %v490_v7  ;;  %p661_p10 = pnand %p660_p9, %p654_p6 }
  0x76   :  { %503 = vmatprep.subr.bf16.mxu0 %v502_v16 }
  0x77   :  { %501 = vmatpush3.bf16.msra.mxu1 %v498_v14 }
  0x78   :  { %462 = vmatmul.mubr.msk.f32.vlgmr.msra.gmra.mrb[0].mxu0 %vm116_vm0, %v111_v19 }
  0x79   :  { %505 = vmatpush3.bf16.msra.mxu0 %v502_v16  ;;  %483 = vmatprep.mubr.msk.f32.mxu0 %vm116_vm0, %v289_v22 }
  0x7a   :  { %473 = vmatmul.mubr.msk.f32.vlgmr.msra.gmra.mrb[0].mxu1 %vm116_vm0, %v201_v21  ;;  %507 = vmatprep.subr.bf16.mxu0 %v506_v20 }
  0x7d   :  { %509 = vmatpush3.bf16.msra.mxu0 %v506_v20 }
  0x80   :  { %484 = vmatmul.mubr.msk.f32.vlgmr.msra.gmra.mrb[2].mxu0 %vm116_vm0, %v290_v23 }
 0x14b   :  { %v463_v24 = vpop.f32.mrb[0].mxu0 }
 0x14c   :  { %199 = vst.msk [vmem:[#allocation13 + $0x8] sm:$0xff] %vm116_vm0, %v463_v24  ;;  %v189_v25 = vpop.f32.mrb[1].mxu0 }
 0x14d   :  { %v474_v26 = vpop.f32.mrb[0].mxu1  ;;  %198 = vst.msk [vmem:[#allocation13] sm:$0xff] %vm116_vm0, %v189_v25 }
 0x14e   :  { %288 = vst.msk [vmem:[#allocation14 + $0x8] sm:$0xff] %vm116_vm0, %v474_v26  ;;  %v278_v27 = vpop.f32.mrb[1].mxu1 }
 0x14f   :  { %287 = vst.msk [vmem:[#allocation14] sm:$0xff] %vm116_vm0, %v278_v27 }
 0x150   :  { %664 = shalt.err (!%p661_p10)
}
 0x151   :  { %s665_s16 = scalar_lea.hbm %s968_s6, 256 }
 0x152   :  { %p666_p11 = scmp.ne.s32.totalorder %s968_s6, %s665_s16  ;;  %p669_p12 = scmp.lt.u32.totalorder %s665_s16, %s968_s6 }
 0x154   :  { %p671_p13 = pnand %p669_p12, %p666_p11 }
 0x156   :  { %674 = shalt.err (!%p671_p13)
}
 0x157   :  { %389 = dma.vmem_to_hbm [thread:$0]  %s384_s9, 256, %s968_s6, [#allocation4], %s733_s17, %s733_s17, %s734_s18  }
 0x158   :  { %s675_s12 = scalar_lea.vmem %s905_s11, 256  ;;  %p680_p1 = scmp.lt.s32.totalorder %s905_s11, %s905_s11 }
 0x159   :  { %p676_p0 = scmp.ne.s32.totalorder %s905_s11, %s675_s12  ;;  %p681_p2 = scmp.lt.s32.totalorder %s675_s12, %s675_s12 }
 0x15b   :  { %p682_p3 = por %p681_p2, %p680_p1 }
 0x15d   :  { %p683_p4 = pnand %p682_p3, %p676_p0 }
 0x15f   :  { %686 = shalt.err (!%p683_p4)
}
 0x160   :  { %s687_s24 = scalar_lea.hbm %s969_s7, 256 }
 0x161   :  { %p688_p5 = scmp.ne.s32.totalorder %s969_s7, %s687_s24  ;;  %p691_p6 = scmp.lt.u32.totalorder %s687_s24, %s969_s7 }
 0x163   :  { %p693_p7 = pnand %p691_p6, %p688_p5 }
 0x165   :  { %696 = shalt.err (!%p693_p7)
}
 0x166   :  { %401 = dma.vmem_to_hbm [thread:$0]  %s905_s11, 256, %s969_s7, [#allocation15], %s733_s17, %s733_s17, %s734_s18   ;;  %v485_v28 = vpop.f32.mrb[2].mxu0 }
 0x167   :  { %s741_s28 = smov [#allocation16]   ;;  %377 = vst.msk [vmem:[#allocation16 + $0x8] sm:$0xff] %vm116_vm0, %v485_v28  ;;  %v367_v29 = vpop.f32.mrb[3].mxu0 }
 0x168   :  { %s407_s4 = sshll.u32 %s741_s28, 4  ;;  %376 = vst.msk [vmem:[#allocation16] sm:$0xff] %vm116_vm0, %v367_v29  ;;  %s408_s4 = int_to_ptr.vmem [resolvable:$true] %s407_s4 }
 0x169   :  { %s697_s0 = scalar_lea.vmem %s408_s4, 256  ;;  %p702_p9 = scmp.lt.s32.totalorder %s408_s4, %s408_s4 }
 0x16a   :  { %p698_p8 = scmp.ne.s32.totalorder %s408_s4, %s697_s0  ;;  %p703_p10 = scmp.lt.s32.totalorder %s697_s0, %s697_s0 }
 0x16c   :  { %p704_p11 = por %p703_p10, %p702_p9 }
 0x16e   :  { %p705_p12 = pnand %p704_p11, %p698_p8 }
 0x170   :  { %708 = shalt.err (!%p705_p12)
}
 0x171   :  { %s709_s7 = scalar_lea.hbm %s970_s8, 256 }
 0x172   :  { %p710_p13 = scmp.ne.s32.totalorder %s970_s8, %s709_s7  ;;  %p713_p0 = scmp.lt.u32.totalorder %s709_s7, %s970_s8 }
 0x174   :  { %p715_p1 = pnand %p713_p0, %p710_p13 }
 0x176   :  { %718 = shalt.err (!%p715_p1)
}
 0x177   :  { %413 = dma.vmem_to_hbm [thread:$0]  %s408_s4, 256, %s970_s8, [#allocation15], %s733_s17, %s733_s17, %s734_s18  }
 0x178   :  { %727 = dma.done.wait [#allocation4], 256  }
 0x179   :  { %728 = vsyncadd [#allocation4], 4294967040 }
 0x17a   :  { %729 = dma.done.wait [#allocation15], 512  }
 0x17b   :  { %730 = vsyncadd [#allocation15], 4294966784 }
 0x17c   :  { %423 = vsyncpa [#allocation3], 1 }
 0x17d   :  { %424 = vsyncpa [#allocation6], 1 }
 0x17e   :  { %425 = vsyncpa [#allocation9], 1 }
 0x17f   :  { %426 = vsyncpa [#allocation12], 1 }
 0x180   :  { %427 = vsyncpa [#allocation4], 1 }
 0x181   :  { %428 = vsyncpa [#allocation15], 1 }

</bundles_post_ra>
